<compile_context>
chip_gen: v6e
topology: v6e:2x2x1
jax: 0.10.0
libtpu: 0.0.40
codegen_flags: <defaults>
</compile_context>

<pallas_src>
import functools
import math

import jax
import jax.numpy as jnp
from jax import lax
from jax.experimental import pallas as pl
from jax.experimental.pallas import tpu as pltpu


def _mha_kernel(x_ref, w_qkv_ref, o_ref, acc_ref, *, num_heads, head_dim, scale):
    E = num_heads * head_dim
    in_dtype = x_ref.dtype

    x = x_ref[...]                    # (S, E)  stored dtype -> MXU at full rate
    w_qkv = w_qkv_ref[...]            # (E, 3E) stored dtype

    # Fused QKV projection: one MXU weight push / one DMA stream, f32 accumulation.
    qkv = jnp.dot(x, w_qkv, preferred_element_type=jnp.float32)       # (S, 3E) f32

    # Fold 1/sqrt(head_dim) into q once, then drop q/k/v back to the operand
    # dtype so the per-head matmuls also run at full MXU rate for bf16 inputs.
    q = (qkv[:, 0:E] * scale).astype(in_dtype)                         # (S, E)
    k = qkv[:, E:2 * E].astype(in_dtype)
    v = qkv[:, 2 * E:3 * E].astype(in_dtype)

    for h in range(num_heads):        # small H -> static unroll, static lane slices
        lo = h * head_dim
        qh = q[:, lo:lo + head_dim]   # (S, Dh)
        kh = k[:, lo:lo + head_dim]
        vh = v[:, lo:lo + head_dim]

        # s = qh @ kh^T, contracting the last dims directly (no explicit .T).
        s = lax.dot_general(qh, kh, (((1,), (1,)), ((), ())),
                            preferred_element_type=jnp.float32)        # (S, S) f32

        # Numerically-stable softmax with deferred normalization (f32 stats).
        m = jnp.max(s, axis=-1, keepdims=True)
        p = jnp.exp(s - m)
        l = jnp.sum(p, axis=-1, keepdims=True)                         # (S, 1)

        o_h = jnp.dot(p.astype(vh.dtype), vh,
                      preferred_element_type=jnp.float32)              # (S, Dh)
        # Normalize via an EUP reciprocal instead of S^2 VPU divides per head.
        acc_ref[:, lo:lo + head_dim] = o_h * pl.reciprocal(l, approx=True)

    # Single lane-dense (S, E) store; the scratch bounds per-head live ranges.
    o_ref[...] = acc_ref[...].astype(o_ref.dtype)
    # TODO(synk): nn.Dropout(p=0.2) is identity in eval mode; training-mode
    # dropout would need pltpu.prng_seed + pltpu.stateful_bernoulli here.
    # TODO(synk): for production sequence lengths, add a KV-tile "arbitrary"
    # grid axis with online softmax (flash pattern) instead of materializing
    # the full (S, S) score matrix per head.


def multi_attention(x, wq_t, wk_t, wv_t, num_heads):
    """x: (B, S, E); w*_t: (E, E) already transposed so q = x @ wq_t == x @ WQ.T."""
    B, S, E = x.shape
    assert E % num_heads == 0, "embedding_dim must be divisible by num_heads"
    head_dim = E // num_heads
    scale = 1.0 / math.sqrt(head_dim)

    # Host-side fusion of the three projection weights (one operand, one DMA).
    w_qkv = jnp.concatenate([wq_t, wk_t, wv_t], axis=1).astype(x.dtype)   # (E, 3E)

    kernel = functools.partial(
        _mha_kernel, num_heads=num_heads, head_dim=head_dim, scale=scale)

    # Constant-index weight block: resident across the grid; single-buffer it
    # when the running JAX supports pipeline_mode (halves its VMEM footprint).
    weight_spec = pl.BlockSpec((E, 3 * E), lambda b: (0, 0))
    if hasattr(pl, "Buffered"):
        try:
            weight_spec = pl.BlockSpec((E, 3 * E), lambda b: (0, 0),
                                       pipeline_mode=pl.Buffered(1))
        except TypeError:
            pass

    return pl.pallas_call(
        kernel,
        out_shape=jax.ShapeDtypeStruct((B, S, E), x.dtype),
        grid_spec=pltpu.PrefetchScalarGridSpec(
            num_scalar_prefetch=0,
            grid=(B,),
            in_specs=[
                # x[b]: batch dim squeezed, full (S, E) tile -> no (8,128) issues.
                pl.BlockSpec((None, S, E), lambda b: (b, 0, 0)),
                weight_spec,
            ],
            out_specs=pl.BlockSpec((None, S, E), lambda b: (b, 0, 0)),
            scratch_shapes=[pltpu.VMEM((S, E), jnp.float32)],
        ),
        compiler_params=pltpu.CompilerParams(
            # Batch items are independent -> shard across TCs on v7x megacore.
            dimension_semantics=("parallel",),
            # 48 MiB is safe on every generation (v7x physical VMEM is 64 MiB;
            # v5e/v6e can raise this further when per-step tiles grow).
            vmem_limit_bytes=48 * 1024 * 1024,
        ),
    )(x, w_qkv)


def _mha_ref(x, wq_t, wk_t, wv_t, num_heads):
    """Pure-JAX f32 reference matching the PyTorch MultiAttention forward (eval)."""
    B, S, E = x.shape
    Dh = E // num_heads
    x = x.astype(jnp.float32)
    wq_t = wq_t.astype(jnp.float32)
    wk_t = wk_t.astype(jnp.float32)
    wv_t = wv_t.astype(jnp.float32)
    q = (x @ wq_t).reshape(B, S, num_heads, Dh).transpose(0, 2, 1, 3)
    k = (x @ wk_t).reshape(B, S, num_heads, Dh).transpose(0, 2, 1, 3)
    v = (x @ wv_t).reshape(B, S, num_heads, Dh).transpose(0, 2, 1, 3)
    s = jnp.einsum("bhqd,bhkd->bhqk", q, k) / math.sqrt(Dh)
    p = jax.nn.softmax(s, axis=-1)
    o = jnp.einsum("bhqk,bhkd->bhqd", p, v)
    return o.transpose(0, 2, 1, 3).reshape(B, S, E)


if __name__ == "__main__":
    # Full-precision f32 matmuls (kernel + reference) for a tight f32 check.
    jax.config.update("jax_default_matmul_precision", "highest")

    key = jax.random.PRNGKey(0)
    kx, kq, kk, kv = jax.random.split(key, 4)

    B, S, E, H = 2, 8, 32, 4                 # small shapes implied by the module
    x = jax.random.normal(kx, (B, S, E), dtype=jnp.float32)
    w_scale = 1.0 / math.sqrt(E)
    # Weights stored already transposed: q = x @ wq_t  (== x @ WQ.T in the module).
    wq_t = jax.random.normal(kq, (E, E), dtype=jnp.float32) * w_scale
    wk_t = jax.random.normal(kk, (E, E), dtype=jnp.float32) * w_scale
    wv_t = jax.random.normal(kv, (E, E), dtype=jnp.float32) * w_scale

    # --- f32 operands: tight correctness check -------------------------------
    out = jax.block_until_ready(multi_attention(x, wq_t, wk_t, wv_t, H))
    ref = _mha_ref(x, wq_t, wk_t, wv_t, H)
    assert out.shape == (B, S, E), out.shape
    assert jnp.allclose(out, ref, rtol=1e-2, atol=1e-2), (
        float(jnp.max(jnp.abs(out - ref))))

    # --- bf16 operands (full-rate MXU path), f32 accumulation inside ---------
    xb = x.astype(jnp.bfloat16)
    wqb = wq_t.astype(jnp.bfloat16)
    wkb = wk_t.astype(jnp.bfloat16)
    wvb = wv_t.astype(jnp.bfloat16)
    out_bf16 = jax.block_until_ready(multi_attention(xb, wqb, wkb, wvb, H))
    ref_bf16 = _mha_ref(xb, wqb, wkb, wvb, H)
    assert out_bf16.shape == (B, S, E), out_bf16.shape
    assert jnp.allclose(out_bf16.astype(jnp.float32), ref_bf16,
                        rtol=5e-2, atol=5e-2), (
        float(jnp.max(jnp.abs(out_bf16.astype(jnp.float32) - ref_bf16))))

    print("KERNEL_OK")
</pallas_src>

<mosaic_0001>
module attributes {stable_mosaic.version = 11 : i64} {
  func.func @_mha_kernel(%arg0: i32, %arg1: memref<1x8x32xf32, #tpu.memory_space<vmem>>, %arg2: memref<32x96xf32, #tpu.memory_space<vmem>>, %arg3: memref<1x8x32xf32, #tpu.memory_space<vmem>>, %arg4: memref<8x32xf32, #tpu.memory_space<vmem>>) attributes {dimension_semantics = [#tpu.dimension_semantics<parallel>], iteration_bounds = array<i64: 2>, scalar_prefetch = 0 : i64, scratch_operands = 1 : i64, tpu.core_type = #tpu.core_type<tc>, window_params = [{transform_indices = @transform_0, window_bounds = array<i64: 1, 8, 32>}, {pipeline_mode = #tpu.pipeline_mode<synchronous>, transform_indices = @transform_1, window_bounds = array<i64: 32, 96>}, {transform_indices = @transform_2, window_bounds = array<i64: 1, 8, 32>}]} {
    %c0 = arith.constant 0 : index
    %c0_0 = arith.constant 0 : index
    %c0_1 = arith.constant 0 : index
    %0 = vector.load %arg1[%c0, %c0_0, %c0_1] : memref<1x8x32xf32, #tpu.memory_space<vmem>>, vector<1x8x32xf32>
    %1 = vector.shape_cast %0 : vector<1x8x32xf32> to vector<8x32xf32>
    %c0_2 = arith.constant 0 : index
    %c0_3 = arith.constant 0 : index
    %2 = vector.load %arg2[%c0_2, %c0_3] : memref<32x96xf32, #tpu.memory_space<vmem>>, vector<32x96xf32>
    %cst = arith.constant dense<0.000000e+00> : vector<8x96xf32>
    %3 = tpu.matmul %1, %2, %cst {dimension_numbers = #tpu.dot_dimension_numbers<[1], [0], [0], [1], [0, 0, 1, 1], [], []>, precision = #tpu.contract_precision<fp32>} : vector<8x32xf32>, vector<32x96xf32>, vector<8x96xf32> -> vector<8x96xf32>
    %4 = vector.extract_strided_slice %3 {offsets = [0, 0], sizes = [8, 32], strides = [1, 1]} : vector<8x96xf32> to vector<8x32xf32>
    %cst_4 = arith.constant 0.353553385 : f32
    %5 = vector.broadcast %cst_4 : f32 to vector<8x32xf32>
    %6 = arith.mulf %4, %5 : vector<8x32xf32>
    %7 = vector.extract_strided_slice %3 {offsets = [0, 32], sizes = [8, 32], strides = [1, 1]} : vector<8x96xf32> to vector<8x32xf32>
    %8 = vector.extract_strided_slice %3 {offsets = [0, 64], sizes = [8, 32], strides = [1, 1]} : vector<8x96xf32> to vector<8x32xf32>
    %9 = vector.extract_strided_slice %6 {offsets = [0, 0], sizes = [8, 8], strides = [1, 1]} : vector<8x32xf32> to vector<8x8xf32>
    %10 = vector.extract_strided_slice %7 {offsets = [0, 0], sizes = [8, 8], strides = [1, 1]} : vector<8x32xf32> to vector<8x8xf32>
    %11 = vector.extract_strided_slice %8 {offsets = [0, 0], sizes = [8, 8], strides = [1, 1]} : vector<8x32xf32> to vector<8x8xf32>
    %cst_5 = arith.constant dense<0.000000e+00> : vector<8x8xf32>
    %12 = tpu.matmul %9, %10, %cst_5 {dimension_numbers = #tpu.dot_dimension_numbers<[1], [1], [0], [0], [0, 0, 1, 0], [], []>, precision = #tpu.contract_precision<fp32>} : vector<8x8xf32>, vector<8x8xf32>, vector<8x8xf32> -> vector<8x8xf32>
    %cst_6 = arith.constant dense<0xFF800000> : vector<8xf32>
    %13 = vector.multi_reduction <maximumf>, %12, %cst_6 [1] : vector<8x8xf32> to vector<8xf32>
    %14 = vector.shape_cast %13 : vector<8xf32> to vector<8x1xf32>
    %15 = vector.broadcast %14 : vector<8x1xf32> to vector<8x8xf32>
    %16 = arith.subf %12, %15 : vector<8x8xf32>
    %17 = math.exp %16 : vector<8x8xf32>
    %cst_7 = arith.constant dense<0.000000e+00> : vector<8xf32>
    %18 = vector.multi_reduction <add>, %17, %cst_7 [1] : vector<8x8xf32> to vector<8xf32>
    %19 = vector.shape_cast %18 : vector<8xf32> to vector<8x1xf32>
    %cst_8 = arith.constant dense<0.000000e+00> : vector<8x8xf32>
    %20 = tpu.matmul %17, %11, %cst_8 {dimension_numbers = #tpu.dot_dimension_numbers<[1], [0], [0], [1], [0, 0, 1, 1], [], []>, precision = #tpu.contract_precision<fp32>} : vector<8x8xf32>, vector<8x8xf32>, vector<8x8xf32> -> vector<8x8xf32>
    %21 = tpu.reciprocal %19 {approx = true} : vector<8x1xf32> -> vector<8x1xf32>
    %22 = vector.broadcast %21 : vector<8x1xf32> to vector<8x8xf32>
    %23 = arith.mulf %20, %22 : vector<8x8xf32>
    %c0_9 = arith.constant 0 : index
    %c0_10 = arith.constant 0 : index
    %24 = vector.load %arg4[%c0_9, %c0_10] : memref<8x32xf32, #tpu.memory_space<vmem>>, vector<8x8xf32>
    tpu.vector_store %arg4[%c0_9, %c0_10], %23 {strides = array<i32>} : memref<8x32xf32, #tpu.memory_space<vmem>>, vector<8x8xf32>,
    %25 = vector.extract_strided_slice %6 {offsets = [0, 8], sizes = [8, 8], strides = [1, 1]} : vector<8x32xf32> to vector<8x8xf32>
    %26 = vector.extract_strided_slice %7 {offsets = [0, 8], sizes = [8, 8], strides = [1, 1]} : vector<8x32xf32> to vector<8x8xf32>
    %27 = vector.extract_strided_slice %8 {offsets = [0, 8], sizes = [8, 8], strides = [1, 1]} : vector<8x32xf32> to vector<8x8xf32>
    %cst_11 = arith.constant dense<0.000000e+00> : vector<8x8xf32>
    %28 = tpu.matmul %25, %26, %cst_11 {dimension_numbers = #tpu.dot_dimension_numbers<[1], [1], [0], [0], [0, 0, 1, 0], [], []>, precision = #tpu.contract_precision<fp32>} : vector<8x8xf32>, vector<8x8xf32>, vector<8x8xf32> -> vector<8x8xf32>
    %cst_12 = arith.constant dense<0xFF800000> : vector<8xf32>
    %29 = vector.multi_reduction <maximumf>, %28, %cst_12 [1] : vector<8x8xf32> to vector<8xf32>
    %30 = vector.shape_cast %29 : vector<8xf32> to vector<8x1xf32>
    %31 = vector.broadcast %30 : vector<8x1xf32> to vector<8x8xf32>
    %32 = arith.subf %28, %31 : vector<8x8xf32>
    %33 = math.exp %32 : vector<8x8xf32>
    %cst_13 = arith.constant dense<0.000000e+00> : vector<8xf32>
    %34 = vector.multi_reduction <add>, %33, %cst_13 [1] : vector<8x8xf32> to vector<8xf32>
    %35 = vector.shape_cast %34 : vector<8xf32> to vector<8x1xf32>
    %cst_14 = arith.constant dense<0.000000e+00> : vector<8x8xf32>
    %36 = tpu.matmul %33, %27, %cst_14 {dimension_numbers = #tpu.dot_dimension_numbers<[1], [0], [0], [1], [0, 0, 1, 1], [], []>, precision = #tpu.contract_precision<fp32>} : vector<8x8xf32>, vector<8x8xf32>, vector<8x8xf32> -> vector<8x8xf32>
    %37 = tpu.reciprocal %35 {approx = true} : vector<8x1xf32> -> vector<8x1xf32>
    %38 = vector.broadcast %37 : vector<8x1xf32> to vector<8x8xf32>
    %39 = arith.mulf %36, %38 : vector<8x8xf32>
    %c0_15 = arith.constant 0 : index
    %c8 = arith.constant 8 : index
    %40 = vector.load %arg4[%c0_15, %c8] : memref<8x32xf32, #tpu.memory_space<vmem>>, vector<8x8xf32>
    tpu.vector_store %arg4[%c0_15, %c8], %39 {strides = array<i32>} : memref<8x32xf32, #tpu.memory_space<vmem>>, vector<8x8xf32>,
    %41 = vector.extract_strided_slice %6 {offsets = [0, 16], sizes = [8, 8], strides = [1, 1]} : vector<8x32xf32> to vector<8x8xf32>
    %42 = vector.extract_strided_slice %7 {offsets = [0, 16], sizes = [8, 8], strides = [1, 1]} : vector<8x32xf32> to vector<8x8xf32>
    %43 = vector.extract_strided_slice %8 {offsets = [0, 16], sizes = [8, 8], strides = [1, 1]} : vector<8x32xf32> to vector<8x8xf32>
    %cst_16 = arith.constant dense<0.000000e+00> : vector<8x8xf32>
    %44 = tpu.matmul %41, %42, %cst_16 {dimension_numbers = #tpu.dot_dimension_numbers<[1], [1], [0], [0], [0, 0, 1, 0], [], []>, precision = #tpu.contract_precision<fp32>} : vector<8x8xf32>, vector<8x8xf32>, vector<8x8xf32> -> vector<8x8xf32>
    %cst_17 = arith.constant dense<0xFF800000> : vector<8xf32>
    %45 = vector.multi_reduction <maximumf>, %44, %cst_17 [1] : vector<8x8xf32> to vector<8xf32>
    %46 = vector.shape_cast %45 : vector<8xf32> to vector<8x1xf32>
    %47 = vector.broadcast %46 : vector<8x1xf32> to vector<8x8xf32>
    %48 = arith.subf %44, %47 : vector<8x8xf32>
    %49 = math.exp %48 : vector<8x8xf32>
    %cst_18 = arith.constant dense<0.000000e+00> : vector<8xf32>
    %50 = vector.multi_reduction <add>, %49, %cst_18 [1] : vector<8x8xf32> to vector<8xf32>
    %51 = vector.shape_cast %50 : vector<8xf32> to vector<8x1xf32>
    %cst_19 = arith.constant dense<0.000000e+00> : vector<8x8xf32>
    %52 = tpu.matmul %49, %43, %cst_19 {dimension_numbers = #tpu.dot_dimension_numbers<[1], [0], [0], [1], [0, 0, 1, 1], [], []>, precision = #tpu.contract_precision<fp32>} : vector<8x8xf32>, vector<8x8xf32>, vector<8x8xf32> -> vector<8x8xf32>
    %53 = tpu.reciprocal %51 {approx = true} : vector<8x1xf32> -> vector<8x1xf32>
    %54 = vector.broadcast %53 : vector<8x1xf32> to vector<8x8xf32>
    %55 = arith.mulf %52, %54 : vector<8x8xf32>
    %c0_20 = arith.constant 0 : index
    %c16 = arith.constant 16 : index
    %56 = vector.load %arg4[%c0_20, %c16] : memref<8x32xf32, #tpu.memory_space<vmem>>, vector<8x8xf32>
    tpu.vector_store %arg4[%c0_20, %c16], %55 {strides = array<i32>} : memref<8x32xf32, #tpu.memory_space<vmem>>, vector<8x8xf32>,
    %57 = vector.extract_strided_slice %6 {offsets = [0, 24], sizes = [8, 8], strides = [1, 1]} : vector<8x32xf32> to vector<8x8xf32>
    %58 = vector.extract_strided_slice %7 {offsets = [0, 24], sizes = [8, 8], strides = [1, 1]} : vector<8x32xf32> to vector<8x8xf32>
    %59 = vector.extract_strided_slice %8 {offsets = [0, 24], sizes = [8, 8], strides = [1, 1]} : vector<8x32xf32> to vector<8x8xf32>
    %cst_21 = arith.constant dense<0.000000e+00> : vector<8x8xf32>
    %60 = tpu.matmul %57, %58, %cst_21 {dimension_numbers = #tpu.dot_dimension_numbers<[1], [1], [0], [0], [0, 0, 1, 0], [], []>, precision = #tpu.contract_precision<fp32>} : vector<8x8xf32>, vector<8x8xf32>, vector<8x8xf32> -> vector<8x8xf32>
    %cst_22 = arith.constant dense<0xFF800000> : vector<8xf32>
    %61 = vector.multi_reduction <maximumf>, %60, %cst_22 [1] : vector<8x8xf32> to vector<8xf32>
    %62 = vector.shape_cast %61 : vector<8xf32> to vector<8x1xf32>
    %63 = vector.broadcast %62 : vector<8x1xf32> to vector<8x8xf32>
    %64 = arith.subf %60, %63 : vector<8x8xf32>
    %65 = math.exp %64 : vector<8x8xf32>
    %cst_23 = arith.constant dense<0.000000e+00> : vector<8xf32>
    %66 = vector.multi_reduction <add>, %65, %cst_23 [1] : vector<8x8xf32> to vector<8xf32>
    %67 = vector.shape_cast %66 : vector<8xf32> to vector<8x1xf32>
    %cst_24 = arith.constant dense<0.000000e+00> : vector<8x8xf32>
    %68 = tpu.matmul %65, %59, %cst_24 {dimension_numbers = #tpu.dot_dimension_numbers<[1], [0], [0], [1], [0, 0, 1, 1], [], []>, precision = #tpu.contract_precision<fp32>} : vector<8x8xf32>, vector<8x8xf32>, vector<8x8xf32> -> vector<8x8xf32>
    %69 = tpu.reciprocal %67 {approx = true} : vector<8x1xf32> -> vector<8x1xf32>
    %70 = vector.broadcast %69 : vector<8x1xf32> to vector<8x8xf32>
    %71 = arith.mulf %68, %70 : vector<8x8xf32>
    %c0_25 = arith.constant 0 : index
    %c24 = arith.constant 24 : index
    %72 = vector.load %arg4[%c0_25, %c24] : memref<8x32xf32, #tpu.memory_space<vmem>>, vector<8x8xf32>
    tpu.vector_store %arg4[%c0_25, %c24], %71 {strides = array<i32>} : memref<8x32xf32, #tpu.memory_space<vmem>>, vector<8x8xf32>,
    %c0_26 = arith.constant 0 : index
    %c0_27 = arith.constant 0 : index
    %73 = vector.load %arg4[%c0_26, %c0_27] : memref<8x32xf32, #tpu.memory_space<vmem>>, vector<8x32xf32>
    %c0_28 = arith.constant 0 : index
    %c0_29 = arith.constant 0 : index
    %c0_30 = arith.constant 0 : index
    %74 = vector.load %arg3[%c0_28, %c0_29, %c0_30] : memref<1x8x32xf32, #tpu.memory_space<vmem>>, vector<1x8x32xf32>
    %75 = vector.shape_cast %74 : vector<1x8x32xf32> to vector<8x32xf32>
    %76 = vector.shape_cast %73 : vector<8x32xf32> to vector<1x8x32xf32>
    tpu.vector_store %arg3[%c0_28, %c0_29, %c0_30], %76 {strides = array<i32>} : memref<1x8x32xf32, #tpu.memory_space<vmem>>, vector<1x8x32xf32>,
    return
  }
  func.func @transform_0(%arg0: i32) -> (i32, i32, i32) {
    %c0_i32 = arith.constant 0 : i32
    %c0_i32_0 = arith.constant 0 : i32
    %c0_i32_1 = arith.constant 0 : i32
    return %arg0, %c0_i32, %c0_i32_0 : i32, i32, i32
  }
  func.func @transform_1(%arg0: i32) -> (i32, i32) {
    %c0_i32 = arith.constant 0 : i32
    %c0_i32_0 = arith.constant 0 : i32
    %c0_i32_1 = arith.constant 0 : i32
    return %c0_i32, %c0_i32_0 : i32, i32
  }
  func.func @transform_2(%arg0: i32) -> (i32, i32, i32) {
    %c0_i32 = arith.constant 0 : i32
    %c0_i32_0 = arith.constant 0 : i32
    %c0_i32_1 = arith.constant 0 : i32
    return %arg0, %c0_i32, %c0_i32_0 : i32, i32, i32
  }
}

</mosaic_0001>

<bundles_post_ra>
// kernel: tpu_custom_call.1
= control target key start
LH: loop header
LB: loop body
LE: loop exit
PB: predicated region body
PF: predicated region fallthrough
CT: control target
= control target key end

     0   :  { %7 = vsyncpa [#allocation4], 0  ;;  %s5653_s0 = inlined_call_operand.hbm [shape: f32[2,8,32], index: 0, kind: input, shape index: {}]   ;;  %s5654_s1 = inlined_call_operand.hbm [shape: f32[32,96], index: 1, kind: input, shape index: {}]   ;;  %s5655_s2 = inlined_call_operand.hbm [shape: f32[2,8,32], index: 2, kind: output, shape index: {}]  }
   0x1   :  { %9 = vsyncpa [#allocation4 + $0x1], 0 }
   0x2   :  { %10 = vsyncpa [#allocation7], 0 }
   0x3   :  { %11 = vsyncpa [#allocation5], 0 }
   0x4   :  { %13 = vsyncpa [#allocation5 + $0x1], 0  ;;  %s5150_s9 = smov 0   ;;  %s5152_s10 = smov 0  }
   0x5   :  { %s5154_s11 = smov 0   ;;  %s5156_s12 = smov 0  }
   0x6 LB: > { %s5171_s13 = sadd.s32 4294967295, %s5112_s12   ;;  %s4453_s14 = sadd.s32 4294967294, %s5112_s12   ;;  %s5112_s12 = sphi %s5156_s12, %s5677_s12   ;;  %s5108_s11 = sphi %s5154_s11, %s5676_s11   ;;  %s5104_s10 = sphi %s5152_s10, %s5675_s10   ;;  %s5100_s9 = sphi %s5150_s9, %s5674_s9  }
   0x7   : > { %p39_p0 = scmp.ne.s32.totalorder %s5104_s10, %s5100_s9  ;;  %p5656_p1 = scmp.eq.s32.totalorder %s5171_s13, 0 }
   0x8   : > { %p90_p3 = scmp.eq.s32.totalorder %s4453_s14, 1  ;;  %p4454_p5 = scmp.ge.s32.totalorder %s5112_s12, 1 }
   0x9   : > { %p5180_p4 = por %p5656_p1, %p39_p0  ;;  %p97_p7 = scmp.lt.s32.totalorder %s5112_s12, 3 }
   0xa   : > { %p5185_p6 = por %p90_p3, %p39_p0  ;;  %s5114_s18 = smov [#allocation6]  }
   0xb   : > { %s5660_s15 = scalar_select %p5180_p4, 1, 0 }
   0xc   : > { %s5661_s16 = scalar_select %p5185_p6, 1, 0 }
   0xd   : > { %p5190_p8 = pnand %p4454_p5, %p97_p7  ;;  %s109_s19 = sshll.u32 %s5114_s18, 4  ;;  %s110_s19 = int_to_ptr.vmem [resolvable:$true] %s109_s19 }
   0xe   : > { %s5204_s21 = sadd.s32 1, %s5112_s12   ;;  %s26_s22 = sadd.s32 1, %s5108_s11 }
   0xf   : > { %s5662_s17 = scalar_select %p5190_p8, 1, 0 }
  0x10   : > { %p4907_p9 = pneg %p5190_p8  ;;  %s23_s23 = ssub.s32 %s5112_s12, %s5204_s21 }
  0x11   : > { %s5001_s24 = scalar_lea.vmem %s110_s19, 512  ;;  %p5009_p5 = scmp.lt.s32.totalorder %s110_s19, %s110_s19 }
  0x12   : > { %p5199_p11 = pnand %p4907_p9, %p5656_p1  ;;  %p5002_p13 = scmp.ne.s32.totalorder %s110_s19, %s5001_s24 }
  0x13   : > { %p5010_p7 = scmp.lt.s32.totalorder %s5001_s24, %s5001_s24 }
  0x14   : > { %p4992_p12 = pneg %p5199_p11 }
  0x15   : > { %p5011_p10 = por %p5010_p7, %p5009_p5 }
  0x16   : > { %p5004_p0 = pnand %p5002_p13, %p4992_p12 }
  0x18   : > { %p5005_p3 = pneg %p5004_p0 }
  0x1a   : > { %p5012_p2 = pnand %p5011_p10, %p5005_p3 }
  0x1c   : > { %5015 = shalt.err (!%p5012_p2)
}
  0x1d   : > { %s5115_s25 = smov 128   ;;  %s5116_s26 = smov 8  }
  0x1e   : > { %4910 = dma.hbm_to_vmem [thread:$0]  (!%p5199_p11), %s5654_s1, 512, %s110_s19, [#allocation7], %s5115_s25, %s5115_s25, %s5116_s26  }
  0x1f   : > { %p24_p9 = scmp.eq.s32.totalorder %s23_s23, 0  ;;  %p33_p12 = scmp.ne.s32.totalorder %s5108_s11, %s5104_s10 }
  0x20   : > { %p34_p10 = scmp.eq.s32.totalorder %s5112_s12, 0  ;;  %p4920_p2 = scmp.lt.s32.totalorder %s5112_s12, 2 }
  0x21   : > { %s5221_s29 = scalar_select %p24_p9, %s5108_s11, %s26_s22  }
  0x22   : > { %p35_p13 = por %p34_p10, %p33_p12  ;;  %p5664_p0 = scmp.eq.s32.totalorder %s5171_s13, 1 }
  0x23   : > { %s123_s3 = sand.u32 1, %s5108_s11   ;;  %s4458_s4 = sshll.u32 %s5112_s12, 7 }
  0x24   : > { %p5225_p3 = por %p5664_p0, %p33_p12  ;;  %s4457_s5 = sshll.u32 %s123_s3, 3 }
  0x25   : > { %s5234_s8 = scalar_lea.hbm %s5653_s0, %s4458_s4  ;;  %s127_s14 = scalar_lea.vmem [#allocation3], %s4457_s5 }
  0x26   : > { %s5665_s30 = scalar_select %p5225_p3, 1, 0 }
  0x27   : > { %s134_s18 = sshll.u32 %s127_s14, 4  ;;  %p5236_p11 = pnand %p4920_p2, %p35_p13  ;;  %s135_s18 = int_to_ptr.vmem [resolvable:$true] %s134_s18 }
  0x28   : > { %s124_s20 = scalar_lea.sflag [#allocation4], %s123_s3  ;;  %s5016_s22 = scalar_lea.hbm %s5234_s8, 128 }
  0x29   : > { %p5017_p5 = scmp.ne.s32.totalorder %s5234_s8, %s5016_s22  ;;  %p5018_p7 = pneg %p5236_p11 }
  0x2a   : > { %s5021_s25 = scalar_lea.hbm %s5653_s0, 256  ;;  %p5022_p10 = scmp.lt.s32.totalorder %s5234_s8, %s5653_s0 }
  0x2b   : > { %p5019_p9 = pnand %p5018_p7, %p5017_p5  ;;  %p5023_p2 = scmp.lt.s32.totalorder %s5021_s25, %s5016_s22 }
  0x2d   : > { %p5020_p12 = pneg %p5019_p9  ;;  %p5024_p13 = por %p5023_p2, %p5022_p10 }
  0x2f   : > { %p5025_p0 = pnand %p5024_p13, %p5020_p12 }
  0x31   : > { %5028 = shalt.err (!%p5025_p0)
}
  0x32   : > { %s5029_s28 = scalar_lea.vmem %s135_s18, 128  ;;  %s5117_s3 = smov [#allocation3]  }
  0x33   : > { %p5030_p1 = scmp.ne.s32.totalorder %s135_s18, %s5029_s28  ;;  %s5034_s4 = sshll.u32 %s5117_s3, 4  ;;  %s5035_s4 = int_to_ptr.vmem [resolvable:$false] %s5034_s4 }
  0x34   : > { %s5036_s5 = scalar_lea.vmem %s5035_s4, 256  ;;  %p5037_p5 = scmp.lt.s32.totalorder %s135_s18, %s5035_s4 }
  0x35   : > { %p5032_p6 = pnand %p5030_p1, %p5018_p7  ;;  %p5038_p9 = scmp.lt.s32.totalorder %s5036_s5, %s5029_s28 }
  0x37   : > { %p5033_p3 = pneg %p5032_p6  ;;  %p5039_p4 = por %p5038_p9, %p5037_p5 }
  0x39   : > { %p5040_p8 = pnand %p5039_p4, %p5033_p3 }
  0x3b   : > { %5043 = shalt.err (!%p5040_p8)
}
  0x3c   : > { %4914 = dma.hbm_to_vmem [thread:$0]  (!%p5236_p11), %s5234_s8, 128, %s135_s18, %s124_s20  }
  0x3d   : > { %p5667_p12 = scmp.ne.s32.totalorder %s5662_s17, 0 }
  0x3e   : > { %s5257_s6 = sand.u32 (!%p5667_p12), 1, %s5104_s10   ;;  %p5668_p1 = scmp.ne.s32.totalorder (!%p5667_p12), %s5660_s15, 0 }
  0x3f   : > { %143 = sbr.rel (%p5667_p12) target bundleno = 2303 (0x8ff), region = 28  ;;  %s4460_s7 = sshll.u32 (!%p5667_p12), %s5257_s6, 3 }
  0x40   : > { %s146_s14 = scalar_lea.sflag (!%p5667_p12), [#allocation4], %s5257_s6  ;;  %s149_s22 = scalar_lea.vmem (!%p5667_p12), [#allocation3], %s4460_s7 }
  0x44   : > { %5087 = dma.done.wait (%p5668_p1), %s146_s14, 128  }
  0x45   : > { %5089 = vsyncadd (%p5668_p1), %s146_s14, 4294967168  ;;  %p5669_p4 = scmp.eq.s32.totalorder %s5171_s13, 0 }
  0x47   : > { %5091 = dma.done.wait (%p5669_p4), [#allocation7], 512   ;;  %p5670_p6 = pmov %p5669_p4 }
  0x48   : > { %v5118_v0 = vmov 0.0   ;;  %vm5119_vm0 = vmmov 0   ;;  %vm179_vm1 = vcmask 261120   ;;  %v178_v1 = vld [vmem:[#allocation6 + $0x18] sm:$0xff]  ;;  %v177_v2 = vld [vmem:[#allocation6 + $0x10] sm:$0xff]  ;;  %v176_v3 = vld [vmem:[#allocation6 + $0x8] sm:$0xff] }
  0x49   : > { %5093 = vsyncadd (%p5670_p6), [#allocation7], 4294966784  ;;  %4593 = vmatprep.subr.mxu0 %v5118_v0  ;;  %4604 = vmatprep.subr.mxu1 %v5118_v0  ;;  %v5277_v4 = vand.u32 4294901760, %v178_v1  ;;  %v5279_v5 = vand.u32 4294901760, %v177_v2  ;;  %v5281_v6 = vand.u32 4294901760, %v176_v3  ;;  %v175_v7 = vld [vmem:[#allocation6] sm:$0xff] }
  0x4a   : > { %4601 = vmatprep.mubr.msk.f32.mxu0 %vm5119_vm0, %v5118_v0  ;;  %4612 = vmatprep.mubr.msk.f32.mxu1 %vm5119_vm0, %v5118_v0  ;;  %v174_v8 = vld [vmem:[%s149_s22] sm:$0xff]  ;;  %v5283_v9 = vand.u32 4294901760, %v175_v7  ;;  %s5120_s15 = smov 64   ;;  %s5121_s17 = smov 96   ;;  %vm672_vm2 = vcmask 64512   ;;  %vm2509_vm3 = vcmask 130112  }
  0x4b   : > { %v181_v10 = vsel %vm179_vm1, %v174_v8, 0  ;;  %4594 = vmatpush3.msra.mxu0 %v5277_v4  ;;  %v288_v11 = vsub.f32 %v178_v1, %v5277_v4  ;;  %v295_v13 = vsub.f32 %v177_v2, %v5279_v5  ;;  %v302_v14 = vsub.f32 %v176_v3, %v5281_v6  ;;  %s5122_s8 = smov 88   ;;  %s5123_s18 = smov 120  }
  0x4c   : > { %v5288_v12 = vand.u32 4294901760, %v181_v10  ;;  %4595 = vmatprep.subr.mxu0 %v5118_v0  ;;  %v309_v15 = vsub.f32 %v175_v7, %v5283_v9  ;;  %s5124_s19 = smov 56   ;;  %s5125_s20 = smov 112   ;;  %vm3432_vm4 = vcmask 195712   ;;  %vm4355_vm5 = vcmask 261312  }
  0x4d   : > { %4596 = vmatpush3.msra.mxu0 %v5279_v5  ;;  %v289_v16 = vand.u32 4294901760, %v288_v11  ;;  %v296_v18 = vand.u32 4294901760, %v295_v13  ;;  %v303_v19 = vand.u32 4294901760, %v302_v14  ;;  %s5126_s23 = smov 80   ;;  %s5127_s24 = smov 48  }
  0x4e   : > { %v253_v17 = vsub.f32 %v181_v10, %v5288_v12  ;;  %4597 = vmatprep.subr.mxu0 %v5118_v0  ;;  %v310_v20 = vand.u32 4294901760, %v309_v15  ;;  %s5128_s25 = smov 72   ;;  %s5129_s26 = smov 104  }
  0x4f   : > { %4598 = vmatpush3.msra.mxu0 %v5281_v6  ;;  %v290_v21 = vsub.f32 %v288_v11, %v289_v16  ;;  %v297_v23 = vsub.f32 %v295_v13, %v296_v18  ;;  %v304_v24 = vsub.f32 %v302_v14, %v303_v19  ;;  %s5130_s27 = smov 40   ;;  %s5131_s28 = smov 8  }
  0x50   : > { %v254_v22 = vand.u32 4294901760, %v253_v17  ;;  %4599 = vmatprep.subr.mxu0 %v5118_v0  ;;  %v311_v28 = vsub.f32 %v309_v15, %v310_v20  ;;  %s5132_s3 = smov 16   ;;  %s5133_s4 = smov 24  }
  0x51   : > { %4600 = vmatpush3.msra.mxu0 %v5283_v9  ;;  %v291_v25 = vand.u32 4294901760, %v290_v21  ;;  %v298_v27 = vand.u32 4294901760, %v297_v23  ;;  %v305_v30 = vand.u32 4294901760, %v304_v24  ;;  %s4464_s5 = sshll.u32 %s5171_s13, 7  ;;  %s173_s14 = scalar_lea.vmem [#allocation8], %s4460_s7 }
  0x52   : > { %v255_v26 = vsub.f32 %v253_v17, %v254_v22  ;;  %4615 = vmatprep.subr.mxu0 %v5118_v0  ;;  %v312_v31 = vand.u32 4294901760, %v311_v28  ;;  %s4373_s22 = sshll.u32 %s173_s14, 4  ;;  %p5671_p3 = scmp.ne.s32.totalorder %s5665_s30, 0  ;;  %s4374_s22 = int_to_ptr.vmem [resolvable:$true] %s4373_s22 }
  0x53   : > { %4605 = vmatpush3.msra.mxu1 %v291_v25 }
  0x54   : > { %v256_v29 = vand.u32 4294901760, %v255_v26  ;;  %4606 = vmatprep.subr.mxu1 %v5118_v0 }
  0x55   : > { %4607 = vmatpush3.msra.mxu1 %v298_v27 }
  0x56   : > { %4602 = vmatmul.mubr.f32.vlgmr.msra.gmra.mxu0 %v256_v29  ;;  %4608 = vmatprep.subr.mxu1 %v5118_v0 }
  0x57   : > { %4616 = vmatpush3.msra.mxu0 %v288_v11  ;;  %4609 = vmatpush3.msra.mxu1 %v305_v30 }
  0x58   : > { %4617 = vmatprep.subr.mxu0 %v5118_v0  ;;  %4610 = vmatprep.subr.mxu1 %v5118_v0 }
  0x59   : > { %4618 = vmatpush3.msra.mxu0 %v295_v13  ;;  %4611 = vmatpush3.msra.mxu1 %v312_v31 }
  0x5a   : > { %4619 = vmatprep.subr.mxu0 %v5118_v0  ;;  %4613 = vmatmul.mubr.f32.vlgmr.msra.gmra.mxu1 %v5288_v12 }
  0x5b   : > { %4620 = vmatpush3.msra.mxu0 %v302_v14  ;;  %4626 = vmatprep.subr.mxu1 %v5118_v0 }
  0x5c   : > { %4621 = vmatprep.subr.mxu0 %v5118_v0  ;;  %4623 = vmatprep.mubr.msk.f32.mxu0 %vm5119_vm0, %v5118_v0 }
  0x5d   : > { %4622 = vmatpush3.msra.mxu0 %v309_v15  ;;  %4627 = vmatpush3.msra.mxu1 %v5277_v4 }
  0x5e   : > { %4624 = vmatmul.mubr.f32.vlgmr.msra.gmra.mxu0 %v253_v17  ;;  %4628 = vmatprep.subr.mxu1 %v5118_v0 }
  0x5f   : > { %4637 = vmatprep.subr.mxu0 %v5118_v0  ;;  %4629 = vmatpush3.msra.mxu1 %v5279_v5 }
  0x60   : > { %4638 = vmatpush3.msra.mxu0 %v289_v16  ;;  %4630 = vmatprep.subr.mxu1 %v5118_v0 }
  0x61   : > { %4639 = vmatprep.subr.mxu0 %v5118_v0  ;;  %4631 = vmatpush3.msra.mxu1 %v5281_v6 }
  0x62   : > { %4640 = vmatpush3.msra.mxu0 %v296_v18  ;;  %4632 = vmatprep.subr.mxu1 %v5118_v0 }
  0x63   : > { %4641 = vmatprep.subr.mxu0 %v5118_v0  ;;  %4633 = vmatpush3.msra.mxu1 %v5283_v9 }
  0x64   : > { %4634 = vmatprep.mubr.msk.f32.mxu1 %vm5119_vm0, %v5118_v0  ;;  %4642 = vmatpush3.msra.mxu0 %v303_v19 }
  0x65   : > { %4635 = vmatmul.mubr.f32.vlgmr.msra.gmra.mxu1 %v254_v22  ;;  %4643 = vmatprep.subr.mxu0 %v5118_v0 }
  0x66   : > { %4648 = vmatprep.subr.mxu1 %v5118_v0  ;;  %4644 = vmatpush3.msra.mxu0 %v310_v20 }
  0x67   : > { %4645 = vmatprep.mubr.msk.f32.mxu0 %vm5119_vm0, %v5118_v0  ;;  %4649 = vmatpush3.msra.mxu1 %v5277_v4 }
  0x68   : > { %4646 = vmatmul.mubr.f32.vlgmr.msra.gmra.mxu0 %v5288_v12  ;;  %4650 = vmatprep.subr.mxu1 %v5118_v0 }
  0x69   : > { %4656 = vmatprep.mubr.msk.f32.mxu1 %vm5119_vm0, %v5118_v0  ;;  %4651 = vmatpush3.msra.mxu1 %v5279_v5 }
  0x6a   : > { %4659 = vmatprep.subr.mxu0 %v5118_v0  ;;  %4652 = vmatprep.subr.mxu1 %v5118_v0 }
  0x6b   : > { %4661 = vmatprep.mubr.msk.f32.mxu0 %vm5119_vm0, %v5118_v0  ;;  %4653 = vmatpush3.msra.mxu1 %v5281_v6 }
  0x6c   : > { %4654 = vmatprep.subr.mxu1 %v5118_v0 }
  0x6d   : > { %4655 = vmatpush3.msra.mxu1 %v5283_v9 }
  0x6e   : > { %4657 = vmatmul.mubr.f32.vlgmr.msra.gmra.mxu1 %v5288_v12  ;;  %4664 = vmatprep.subr.mxu1 %v5118_v0 }
  0x6f   : > { %4666 = vmatprep.mubr.msk.f32.mxu1 %vm5119_vm0, %v5118_v0 }
 0x116   : > { %v258_v32 = vpop.f32.mrf.mxu0 }
 0x118   : > { %v4603_v33 = vpop.f32.mrf.mxu0 }
 0x11a   : > { %v349_v34 = vpop.f32.mrf.mxu1 }
 0x11b   : > { %v350_v38 = vadd.f32 %v349_v34, %v258_v32 }
 0x11c   : > { %v4614_v35 = vpop.f32.mrf.mxu1 }
 0x11e   : > { %v429_v36 = vpop.f32.mrf.mxu0 }
 0x11f   : > { %v430_v41 = vadd.f32 %v429_v36, %v350_v38 }
 0x120   : > { %v4625_v37 = vpop.f32.mrf.mxu0 }
 0x125   : > { %v506_v39 = vpop.f32.mrf.mxu1 }
 0x126   : > { %v507_v43 = vadd.f32 %v506_v39, %v430_v41 }
 0x127   : > { %v4636_v40 = vpop.f32.mrf.mxu1 }
 0x128   : > { %v589_v42 = vpop.f32.mrf.mxu0 }
 0x129   : > { %v590_v45 = vadd.f32 %v589_v42, %v507_v43 }
 0x12a   : > { %v4647_v44 = vpop.f32.mrf.mxu0 }
 0x12e   : > { %v664_v46 = vpop.f32.mrf.mxu1 }
 0x12f   : > { %v5344_v47 = vadd.f32 %v664_v46, %v590_v45 }
 0x130   : > { %v4658_v48 = vpop.f32.mrf.mxu1 }
 0x131   : > { %1133 = vrot.lane.b32.xlu1 %v5344_v47, %s5120_s15  ;;  %670 = vrot.lane.b32.xlu0 %v5344_v47, %s5121_s17  ;;  %v5350_v49 = vmul.f32 0.35355338, %v5344_v47 }
 0x133   : > { %v674_v50 = vsel %vm672_vm2, %v5350_v49, 0 }
 0x134   : > { %v744_v51 = vand.u32 4294901760, %v674_v50 }
 0x135   : > { %1590 = vrot.lane.b32.xlu1 %v5344_v47, %s5122_s8  ;;  %s5615_s8 = scalar_lea.hbm %s5655_s2, %s4464_s5 }
 0x136   : > { %v745_v52 = vsub.f32 %v674_v50, %v744_v51 }
 0x138   : > { %v746_v53 = vand.u32 4294901760, %v745_v52 }
 0x139   : > { %1588 = vrot.lane.b32.xlu1 %v5350_v49, %s5123_s18  ;;  %s4360_s18 = scalar_lea.sflag [#allocation5], %s5257_s6 }
 0x13a   : > { %v747_v56 = vsub.f32 %v745_v52, %v746_v53 }
 0x13c   : > { %v748_v60 = vand.u32 4294901760, %v747_v56 }
 0x1a3   : > { %v671_v54 = vpop.permute.xlu0 %670  ;;  %v1134_v58 = vpop.permute.xlu1 %1133 }
 0x1a4   : > { %v676_v55 = vsel %vm672_vm2, %v671_v54, 0  ;;  %v5357_v61 = vand.u32 4294901760, %v1134_v58 }
 0x1a5   : > { %v709_v57 = vand.u32 4294901760, %v676_v55 }
 0x1a6   : > { %v5363_v1 = vsub.f32 %v1134_v58, %v5357_v61 }
 0x1a7   : > { %v786_v59 = vsub.f32 %v676_v55, %v709_v57  ;;  %4660 = vmatpush3.xpose.msra.mxu0 %v709_v57  ;;  %v1591_v27 = vpop.permute.xlu1 %1590 }
 0x1a8   : > { %4669 = vmatprep.subr.mxu0 %v5118_v0  ;;  %v1248_v3 = vand.u32 4294901760, %v5363_v1  ;;  %v1594_v28 = vsel %vm672_vm2, %v1591_v27, 0 }
 0x1a9   : > { %v787_v62 = vand.u32 4294901760, %v786_v59  ;;  %v1627_v29 = vand.u32 4294901760, %v1594_v28 }
 0x1aa   : > { %4662 = vmatmul.mubr.f32.vlgmr.msra.gmra.mxu0 %v748_v60  ;;  %v1249_v4 = vsub.f32 %v5363_v1, %v1248_v3 }
 0x1ab   : > { %v788_v63 = vsub.f32 %v786_v59, %v787_v62  ;;  %4670 = vmatpush3.xpose.msra.mxu0 %v786_v59  ;;  %4671 = vmatprep.mubr.msk.f32.mxu0 %vm5119_vm0, %v5118_v0  ;;  %v5390_v30 = vsub.f32 %v1594_v28, %v1627_v29  ;;  %v1589_v32 = vpop.permute.xlu1 %1588 }
 0x1ac   : > { %4679 = vmatprep.subr.mxu0 %v5118_v0  ;;  %v1250_v5 = vand.u32 4294901760, %v1249_v4  ;;  %v1592_v36 = vsel %vm672_vm2, %v1589_v32, 0 }
 0x1ad   : > { %v789_v2 = vand.u32 4294901760, %v788_v63  ;;  %v1705_v35 = vand.u32 4294901760, %v5390_v30  ;;  %v1662_v39 = vand.u32 4294901760, %v1592_v36 }
 0x1ae   : > { %4672 = vmatmul.mubr.f32.vlgmr.msra.gmra.mxu0 %v745_v52 }
 0x1af   : > { %4665 = vmatpush3.xpose.msra.mxu1 %v789_v2  ;;  %4680 = vmatpush3.xpose.msra.mxu0 %v787_v62  ;;  %v1706_v41 = vsub.f32 %v5390_v30, %v1705_v35  ;;  %v1663_v44 = vsub.f32 %v1592_v36, %v1662_v39 }
 0x1b0   : > { %4681 = vmatprep.mubr.msk.f32.mxu0 %vm5119_vm0, %v5118_v0  ;;  %4674 = vmatprep.subr.mxu1 %v5118_v0 }
 0x1b1   : > { %4689 = vmatprep.subr.mxu0 %v5118_v0  ;;  %v1707_v46 = vand.u32 4294901760, %v1706_v41  ;;  %v1664_v50 = vand.u32 4294901760, %v1663_v44 }
 0x1b2   : > { %4667 = vmatmul.mubr.f32.vlgmr.msra.gmra.mxu1 %v744_v51  ;;  %4682 = vmatmul.mubr.f32.vlgmr.msra.gmra.mxu0 %v744_v51 }
 0x1b3   : > { %4675 = vmatpush3.xpose.msra.mxu1 %v709_v57  ;;  %4690 = vmatpush3.msra.mxu0 %v5357_v61  ;;  %v1665_v52 = vsub.f32 %v1663_v44, %v1664_v50 }
 0x1b4   : > { %4676 = vmatprep.mubr.msk.f32.mxu1 %vm5119_vm0, %v5118_v0  ;;  %4684 = vmatprep.subr.mxu1 %v5118_v0 }
 0x1b5   : > { %4691 = vmatprep.mubr.msk.f32.mxu0 %vm5119_vm0, %v5118_v0  ;;  %4699 = vmatprep.subr.mxu0 %v5118_v0  ;;  %v1666_v54 = vand.u32 4294901760, %v1665_v52 }
 0x1b6   : > { %4677 = vmatmul.mubr.f32.vlgmr.msra.gmra.mxu1 %v746_v53 }
 0x1b7   : > { %4685 = vmatpush3.xpose.msra.mxu1 %v709_v57  ;;  %4686 = vmatprep.mubr.msk.f32.mxu1 %vm5119_vm0, %v5118_v0 }
 0x1b8   : > { %4694 = vmatprep.subr.mxu1 %v5118_v0 }
 0x1ba   : > { %4687 = vmatmul.mubr.f32.vlgmr.msra.gmra.mxu1 %v744_v51 }
 0x1bb   : > { %4695 = vmatpush3.msra.mxu1 %v1250_v5  ;;  %4696 = vmatprep.mubr.msk.f32.mxu1 %vm5119_vm0, %v5118_v0 }
 0x1bc   : > { %4704 = vmatprep.subr.mxu1 %v5118_v0 }
 0x26a   : > { %v750_v6 = vpop.f32.mrf.mxu0 }
 0x26c   : > { %v4663_v7 = vpop.f32.mrf.mxu0 }
 0x26e   : > { %v900_v8 = vpop.f32.mrf.mxu0 }
 0x270   : > { %v4673_v9 = vpop.f32.mrf.mxu0 }
 0x272   : > { %v826_v10 = vpop.f32.mrf.mxu1  ;;  %v1048_v11 = vpop.f32.mrf.mxu0 }
 0x273   : > { %v827_v12 = vadd.f32 %v826_v10, %v750_v6 }
 0x274   : > { %v4668_v13 = vpop.f32.mrf.mxu1  ;;  %v4683_v14 = vpop.f32.mrf.mxu0 }
 0x275   : > { %v901_v15 = vadd.f32 %v900_v8, %v827_v12 }
 0x276   : > { %v974_v16 = vpop.f32.mrf.mxu1 }
 0x277   : > { %v975_v17 = vadd.f32 %v974_v16, %v901_v15 }
 0x278   : > { %v4678_v18 = vpop.f32.mrf.mxu1 }
 0x279   : > { %v1049_v19 = vadd.f32 %v1048_v11, %v975_v17 }
 0x27a   : > { %v1120_v20 = vpop.f32.mrf.mxu1 }
 0x27b   : > { %v1121_v21 = vadd.f32 %v1120_v20, %v1049_v19 }
 0x27c   : > { %v4688_v22 = vpop.f32.mrf.mxu1 }
 0x27d   : > { %v1124_v23 = vsel %vm672_vm2, %v1121_v21, -inf }
 0x27e   : > { %1125 = vmax.xlane.f32.xlu0 %v1124_v23 }
 0x294   : > { %2051 = vrot.lane.b32.xlu0 %v5344_v47, %s5124_s19  ;;  %s5044_s19 = scalar_lea.vmem %s4374_s22, 128 }
 0x295   : > { %p5045_p8 = scmp.ne.s32.totalorder %s4374_s22, %s5044_s19 }
 0x297   : > { %p5046_p11 = pnand %p5045_p8, %p5671_p3 }
 0x298   : > { %2511 = vrot.lane.b32.xlu0 %v5350_v49, %s5125_s20  ;;  %s5134_s20 = smov [#allocation8]  }
 0x299   : > { %p5047_p7 = pneg %p5046_p11  ;;  %s5048_s13 = sshll.u32 %s5134_s20, 4  ;;  %s5049_s13 = int_to_ptr.vmem [resolvable:$false] %s5048_s13 }
 0x29a   : > { %s5050_s7 = scalar_lea.vmem %s5049_s13, 256  ;;  %p5051_p10 = scmp.lt.s32.totalorder %s4374_s22, %s5049_s13 }
 0x29b   : > { %p5052_p2 = scmp.lt.s32.totalorder %s5050_s7, %s5044_s19 }
 0x29d   : > { %p5053_p13 = por %p5052_p2, %p5051_p10 }
 0x29f   : > { %p5054_p0 = pnand %p5053_p13, %p5047_p7 }
 0x307   : > { %v1126_v24 = vpop.xlane.xlu0 %1125 }
 0x308   : > { %v1127_v25 = vsub.f32 %v1121_v21, %v1126_v24 }
 0x30a   : > { %v1128_v26 = vmul.f32 1.442695, %v1127_v25 }
 0x30b   : > { %v2052_v37 = vpop.permute.xlu0 %2051 }
 0x30c   : > { %4974 = vpow2.f32 %v1128_v26  ;;  %v5403_v42 = vand.u32 4294901760, %v2052_v37 }
 0x30e   : > { %v5410_v48 = vsub.f32 %v2052_v37, %v5403_v42 }
 0x30f   : > { %v2512_v37 = vpop.permute.xlu0 %2511 }
 0x310   : > { %v2166_v51 = vand.u32 4294901760, %v5410_v48 }
 0x312   : > { %v2167_v53 = vsub.f32 %v5410_v48, %v2166_v51 }
 0x314   : > { %v2168_v55 = vand.u32 4294901760, %v2167_v53 }
 0x319   : > { %v5392_v31 = vpop.eup %4974 }
 0x31a   : > { %v1137_v33 = vsel %vm672_vm2, %v5392_v31, 0 }
 0x31b   : > { %v1205_v34 = vand.u32 4294901760, %v1137_v33 }
 0x31d   : > { %v1206_v38 = vsub.f32 %v1137_v33, %v1205_v34  ;;  %4697 = vmatmul.mubr.f32.vlgmr.msra.gmra.mxu1 %v1205_v34 }
 0x31e   : > { %4705 = vmatpush3.msra.mxu1 %v5357_v61  ;;  %4706 = vmatprep.mubr.msk.f32.mxu1 %vm5119_vm0, %v5118_v0 }
 0x31f   : > { %4714 = vmatprep.subr.mxu1 %v5118_v0  ;;  %v1207_v40 = vand.u32 4294901760, %v1206_v38 }
 0x321   : > { %4707 = vmatmul.mubr.f32.vlgmr.msra.gmra.mxu1 %v1207_v40  ;;  %v1208_v43 = vsub.f32 %v1206_v38, %v1207_v40  ;;  %v2515_v40 = vsel %vm672_vm2, %v2512_v37, 0 }
 0x322   : > { %4715 = vmatpush3.msra.mxu1 %v5357_v61  ;;  %4716 = vmatprep.mubr.msk.f32.mxu1 %vm5119_vm0, %v5118_v0 }
 0x323   : > { %4724 = vmatprep.subr.mxu1 %v5118_v0  ;;  %v1209_v45 = vand.u32 4294901760, %v1208_v43 }
 0x325   : > { %4692 = vmatmul.mubr.f32.vlgmr.msra.gmra.mxu0 %v1209_v45  ;;  %4717 = vmatmul.mubr.f32.vlgmr.msra.gmra.mxu1 %v1205_v34 }
 0x326   : > { %4700 = vmatpush3.msra.mxu0 %v5363_v1  ;;  %4725 = vmatpush3.xpose.msra.mxu1 %v1707_v46 }
 0x327   : > { %4701 = vmatprep.mubr.msk.f32.mxu0 %vm5119_vm0, %v5118_v0  ;;  %4709 = vmatprep.subr.mxu0 %v5118_v0 }
 0x328   : > { %4726 = vmatprep.mubr.msk.f32.mxu1 %vm5119_vm0, %v5118_v0  ;;  %4734 = vmatprep.subr.mxu1 %v5118_v0 }
 0x329   : > { %4702 = vmatmul.mubr.f32.vlgmr.msra.gmra.mxu0 %v1206_v38  ;;  %4727 = vmatmul.mubr.f32.vlgmr.msra.gmra.mxu1 %v1662_v39 }
 0x32a   : > { %4710 = vmatpush3.msra.mxu0 %v1248_v3  ;;  %4735 = vmatpush3.xpose.msra.mxu1 %v1627_v29 }
 0x32b   : > { %4711 = vmatprep.mubr.msk.f32.mxu0 %vm5119_vm0, %v5118_v0  ;;  %4719 = vmatprep.subr.mxu0 %v5118_v0 }
 0x32c   : > { %4736 = vmatprep.mubr.msk.f32.mxu1 %vm5119_vm0, %v5118_v0  ;;  %4744 = vmatprep.subr.mxu1 %v5118_v0 }
 0x32d   : > { %4712 = vmatmul.mubr.f32.vlgmr.msra.gmra.mxu0 %v1205_v34  ;;  %4737 = vmatmul.mubr.f32.vlgmr.msra.gmra.mxu1 %v1664_v50 }
 0x32e   : > { %4720 = vmatpush3.xpose.msra.mxu0 %v1627_v29  ;;  %4745 = vmatpush3.xpose.msra.mxu1 %v1627_v29 }
 0x32f   : > { %4721 = vmatprep.mubr.msk.f32.mxu0 %vm5119_vm0, %v5118_v0  ;;  %4729 = vmatprep.subr.mxu0 %v5118_v0 }
 0x330   : > { %4746 = vmatprep.mubr.msk.f32.mxu1 %vm5119_vm0, %v5118_v0  ;;  %4754 = vmatprep.subr.mxu1 %v5118_v0 }
 0x331   : > { %4722 = vmatmul.mubr.f32.vlgmr.msra.gmra.mxu0 %v1666_v54  ;;  %4747 = vmatmul.mubr.f32.vlgmr.msra.gmra.mxu1 %v1662_v39 }
 0x332   : > { %4730 = vmatpush3.xpose.msra.mxu0 %v5390_v30  ;;  %4755 = vmatpush3.msra.mxu1 %v2168_v55 }
 0x333   : > { %4731 = vmatprep.mubr.msk.f32.mxu0 %vm5119_vm0, %v5118_v0  ;;  %4739 = vmatprep.subr.mxu0 %v5118_v0 }
 0x334   : > { %4756 = vmatprep.mubr.msk.f32.mxu1 %vm5119_vm0, %v5118_v0  ;;  %4764 = vmatprep.subr.mxu1 %v5118_v0 }
 0x335   : > { %4732 = vmatmul.mubr.f32.vlgmr.msra.gmra.mxu0 %v1663_v44  ;;  %v2585_v44 = vand.u32 4294901760, %v2515_v40 }
 0x336   : > { %4740 = vmatpush3.xpose.msra.mxu0 %v1705_v35  ;;  %4741 = vmatprep.mubr.msk.f32.mxu0 %vm5119_vm0, %v5118_v0 }
 0x337   : > { %4749 = vmatprep.subr.mxu0 %v5118_v0  ;;  %v2586_v53 = vsub.f32 %v2515_v40, %v2585_v44 }
 0x339   : > { %4742 = vmatmul.mubr.f32.vlgmr.msra.gmra.mxu0 %v1662_v39 }
 0x33a   : > { %4750 = vmatpush3.msra.mxu0 %v5403_v42  ;;  %4751 = vmatprep.mubr.msk.f32.mxu0 %vm5119_vm0, %v5118_v0 }
 0x33b   : > { %4759 = vmatprep.subr.mxu0 %v5118_v0 }
 0x3dd   : > { %v1287_v56 = vpop.f32.mrf.mxu1 }
 0x3df   : > { %v4698_v57 = vpop.f32.mrf.mxu1 }
 0x3e0   : > { %v2587_v57 = vand.u32 4294901760, %v2586_v53 }
 0x3e1   : > { %v1435_v58 = vpop.f32.mrf.mxu1 }
 0x3e3   : > { %v4708_v59 = vpop.f32.mrf.mxu1 }
 0x3e5   : > { %v1211_v60 = vpop.f32.mrf.mxu0  ;;  %v1581_v61 = vpop.f32.mrf.mxu1 }
 0x3e6   : > { %v1288_v62 = vadd.f32 %v1287_v56, %v1211_v60 }
 0x3e7   : > { %v4693_v63 = vpop.f32.mrf.mxu0  ;;  %v4718_v1 = vpop.f32.mrf.mxu1 }
 0x3e9   : > { %v1361_v2 = vpop.f32.mrf.mxu0  ;;  %v1744_v3 = vpop.f32.mrf.mxu1 }
 0x3ea   : > { %v1362_v4 = vadd.f32 %v1361_v2, %v1288_v62 }
 0x3eb   : > { %v4703_v5 = vpop.f32.mrf.mxu0  ;;  %v4728_v6 = vpop.f32.mrf.mxu1 }
 0x3ec   : > { %v1436_v7 = vadd.f32 %v1435_v58, %v1362_v4  ;;  %v2588_v58 = vsub.f32 %v2586_v53, %v2587_v57 }
 0x3ed   : > { %v1509_v8 = vpop.f32.mrf.mxu0  ;;  %v1892_v9 = vpop.f32.mrf.mxu1 }
 0x3ee   : > { %v1510_v10 = vadd.f32 %v1509_v8, %v1436_v7 }
 0x3ef   : > { %v4713_v11 = vpop.f32.mrf.mxu0  ;;  %v4738_v12 = vpop.f32.mrf.mxu1 }
 0x3f0   : > { %v5451_v13 = vadd.f32 %v1581_v61, %v1510_v10 }
 0x3f1   : > { %v1668_v14 = vpop.f32.mrf.mxu0  ;;  %v2038_v15 = vpop.f32.mrf.mxu1 }
 0x3f2   : > { %v1745_v18 = vadd.f32 %v1744_v3, %v1668_v14 }
 0x3f3   : > { %v4723_v16 = vpop.f32.mrf.mxu0  ;;  %v4748_v17 = vpop.f32.mrf.mxu1 }
 0x3f5   : > { %v1818_v19 = vpop.f32.mrf.mxu0 }
 0x3f6   : > { %v1819_v20 = vadd.f32 %v1818_v19, %v1745_v18 }
 0x3f7   : > { %v4733_v21 = vpop.f32.mrf.mxu0 }
 0x3f8   : > { %v1893_v22 = vadd.f32 %v1892_v9, %v1819_v20 }
 0x3f9   : > { %v1966_v23 = vpop.f32.mrf.mxu0 }
 0x3fa   : > { %v1967_v24 = vadd.f32 %v1966_v23, %v1893_v22 }
 0x3fb   : > { %v4743_v25 = vpop.f32.mrf.mxu0 }
 0x3fc   : > { %v2039_v26 = vadd.f32 %v2038_v15, %v1967_v24 }
 0x3fe   : > { %v2042_v27 = vsel %vm672_vm2, %v2039_v26, -inf }
 0x3ff   : > { %2043 = vmax.xlane.f32.xlu1 %v2042_v27 }
 0x410   : > { %2513 = vrot.lane.b32.xlu1 %v5344_v47, %s5126_s23 }
 0x414   : > { %2974 = vrot.lane.b32.xlu1 %v5344_v47, %s5127_s24 }
 0x418   : > { %3436 = vrot.lane.b32.xlu1 %v5344_v47, %s5128_s25 }
 0x41c   : > { %3434 = vrot.lane.b32.xlu1 %v5350_v49, %s5129_s26 }
 0x488   : > { %v2044_v28 = vpop.xlane.xlu1 %2043 }
 0x489   : > { %v2045_v29 = vsub.f32 %v2039_v26, %v2044_v28 }
 0x48b   : > { %v2046_v30 = vmul.f32 1.442695, %v2045_v29 }
 0x48c   : > { %v2514_v32 = vpop.permute.xlu1 %2513 }
 0x48d   : > { %4976 = vpow2.f32 %v2046_v30  ;;  %v2517_v33 = vsel %vm672_vm2, %v2514_v32, 0 }
 0x48e   : > { %v2550_v34 = vand.u32 4294901760, %v2517_v33 }
 0x490   : > { %v5459_v35 = vsub.f32 %v2517_v33, %v2550_v34  ;;  %v2975_v41 = vpop.permute.xlu1 %2974 }
 0x491   : > { %v5472_v50 = vand.u32 4294901760, %v2975_v41 }
 0x492   : > { %v2628_v49 = vand.u32 4294901760, %v5459_v35 }
 0x493   : > { %v5479_v56 = vsub.f32 %v2975_v41, %v5472_v50 }
 0x494   : > { %v2629_v46 = vsub.f32 %v5459_v35, %v2628_v49 }
 0x496   : > { %v2630_v55 = vand.u32 4294901760, %v2629_v46 }
 0x49a   : > { %v5461_v36 = vpop.eup %4976 }
 0x49b   : > { %v2055_v38 = vsel %vm672_vm2, %v5461_v36, 0 }
 0x49c   : > { %v2123_v39 = vand.u32 4294901760, %v2055_v38 }
 0x49e   : > { %v2124_v43 = vsub.f32 %v2055_v38, %v2123_v39  ;;  %4757 = vmatmul.mubr.f32.vlgmr.msra.gmra.mxu1 %v2123_v39  ;;  %v3437_v38 = vpop.permute.xlu1 %3436 }
 0x49f   : > { %4765 = vmatpush3.msra.mxu1 %v5403_v42  ;;  %4766 = vmatprep.mubr.msk.f32.mxu1 %vm5119_vm0, %v5118_v0 }
 0x4a0   : > { %4774 = vmatprep.subr.mxu1 %v5118_v0  ;;  %v2125_v45 = vand.u32 4294901760, %v2124_v43 }
 0x4a2   : > { %4767 = vmatmul.mubr.f32.vlgmr.msra.gmra.mxu1 %v2125_v45  ;;  %v2126_v52 = vsub.f32 %v2124_v43, %v2125_v45 }
 0x4a3   : > { %4775 = vmatpush3.msra.mxu1 %v5403_v42  ;;  %4776 = vmatprep.mubr.msk.f32.mxu1 %vm5119_vm0, %v5118_v0  ;;  %v3089_v42 = vand.u32 4294901760, %v5479_v56 }
 0x4a4   : > { %4784 = vmatprep.subr.mxu1 %v5118_v0  ;;  %v2127_v54 = vand.u32 4294901760, %v2126_v52 }
 0x4a5   : > { %v3090_v59 = vsub.f32 %v5479_v56, %v3089_v42 }
 0x4a6   : > { %4752 = vmatmul.mubr.f32.vlgmr.msra.gmra.mxu0 %v2127_v54  ;;  %4777 = vmatmul.mubr.f32.vlgmr.msra.gmra.mxu1 %v2123_v39 }
 0x4a7   : > { %4760 = vmatpush3.msra.mxu0 %v5410_v48  ;;  %4785 = vmatpush3.xpose.msra.mxu1 %v2630_v55  ;;  %v2589_v48 = vand.u32 4294901760, %v2588_v58 }
 0x4a8   : > { %4761 = vmatprep.mubr.msk.f32.mxu0 %vm5119_vm0, %v5118_v0  ;;  %4769 = vmatprep.subr.mxu0 %v5118_v0 }
 0x4a9   : > { %4786 = vmatprep.mubr.msk.f32.mxu1 %vm5119_vm0, %v5118_v0  ;;  %4794 = vmatprep.subr.mxu1 %v5118_v0 }
 0x4aa   : > { %4762 = vmatmul.mubr.f32.vlgmr.msra.gmra.mxu0 %v2124_v43  ;;  %4787 = vmatmul.mubr.f32.vlgmr.msra.gmra.mxu1 %v2585_v44  ;;  %v3435_v43 = vpop.permute.xlu1 %3434 }
 0x4ab   : > { %4770 = vmatpush3.msra.mxu0 %v2166_v51  ;;  %4795 = vmatpush3.xpose.msra.mxu1 %v2550_v34  ;;  %v3091_v51 = vand.u32 4294901760, %v3090_v59  ;;  %v3438_v52 = vsel %vm672_vm2, %v3435_v43, 0 }
 0x4ac   : > { %4771 = vmatprep.mubr.msk.f32.mxu0 %vm5119_vm0, %v5118_v0  ;;  %4779 = vmatprep.subr.mxu0 %v5118_v0  ;;  %v3508_v55 = vand.u32 4294901760, %v3438_v52 }
 0x4ad   : > { %4796 = vmatprep.mubr.msk.f32.mxu1 %vm5119_vm0, %v5118_v0  ;;  %4804 = vmatprep.subr.mxu1 %v5118_v0 }
 0x4ae   : > { %4772 = vmatmul.mubr.f32.vlgmr.msra.gmra.mxu0 %v2123_v39  ;;  %4797 = vmatmul.mubr.f32.vlgmr.msra.gmra.mxu1 %v2587_v57  ;;  %v3440_v39 = vsel %vm672_vm2, %v3437_v38, 0 }
 0x4af   : > { %4780 = vmatpush3.xpose.msra.mxu0 %v2550_v34  ;;  %4805 = vmatpush3.xpose.msra.mxu1 %v2550_v34  ;;  %v3473_v40 = vand.u32 4294901760, %v3440_v39 }
 0x4b0   : > { %4781 = vmatprep.mubr.msk.f32.mxu0 %vm5119_vm0, %v5118_v0  ;;  %4789 = vmatprep.subr.mxu0 %v5118_v0 }
 0x4b1   : > { %4806 = vmatprep.mubr.msk.f32.mxu1 %vm5119_vm0, %v5118_v0  ;;  %4814 = vmatprep.subr.mxu1 %v5118_v0 }
 0x4b2   : > { %4782 = vmatmul.mubr.f32.vlgmr.msra.gmra.mxu0 %v2589_v48  ;;  %4807 = vmatmul.mubr.f32.vlgmr.msra.gmra.mxu1 %v2585_v44 }
 0x4b3   : > { %4790 = vmatpush3.xpose.msra.mxu0 %v5459_v35  ;;  %4815 = vmatpush3.msra.mxu1 %v3091_v51  ;;  %v3509_v51 = vsub.f32 %v3438_v52, %v3508_v55 }
 0x4b4   : > { %4791 = vmatprep.mubr.msk.f32.mxu0 %vm5119_vm0, %v5118_v0  ;;  %4799 = vmatprep.subr.mxu0 %v5118_v0 }
 0x4b5   : > { %4816 = vmatprep.mubr.msk.f32.mxu1 %vm5119_vm0, %v5118_v0  ;;  %4824 = vmatprep.subr.mxu1 %v5118_v0 }
 0x4b6   : > { %4792 = vmatmul.mubr.f32.vlgmr.msra.gmra.mxu0 %v2586_v53 }
 0x4b7   : > { %4800 = vmatpush3.xpose.msra.mxu0 %v2628_v49  ;;  %4801 = vmatprep.mubr.msk.f32.mxu0 %vm5119_vm0, %v5118_v0  ;;  %v5525_v49 = vsub.f32 %v3440_v39, %v3473_v40 }
 0x4b8   : > { %4809 = vmatprep.subr.mxu0 %v5118_v0 }
 0x4ba   : > { %4802 = vmatmul.mubr.f32.vlgmr.msra.gmra.mxu0 %v2585_v44 }
 0x4bb   : > { %4810 = vmatpush3.msra.mxu0 %v5472_v50  ;;  %4811 = vmatprep.mubr.msk.f32.mxu0 %vm5119_vm0, %v5118_v0 }
 0x4bc   : > { %4819 = vmatprep.subr.mxu0 %v5118_v0 }
 0x55e   : > { %v2205_v60 = vpop.f32.mrf.mxu1 }
 0x560   : > { %v4758_v61 = vpop.f32.mrf.mxu1 }
 0x562   : > { %v2353_v62 = vpop.f32.mrf.mxu1 }
 0x564   : > { %v4768_v63 = vpop.f32.mrf.mxu1 }
 0x565   : > { %v3510_v63 = vand.u32 4294901760, %v3509_v51 }
 0x566   : > { %v2129_v1 = vpop.f32.mrf.mxu0  ;;  %v2499_v2 = vpop.f32.mrf.mxu1 }
 0x567   : > { %v2206_v3 = vadd.f32 %v2205_v60, %v2129_v1  ;;  %v3511_v1 = vsub.f32 %v3509_v51, %v3510_v63 }
 0x568   : > { %v4753_v4 = vpop.f32.mrf.mxu0  ;;  %v4778_v5 = vpop.f32.mrf.mxu1 }
 0x56a   : > { %v2279_v6 = vpop.f32.mrf.mxu0  ;;  %v2667_v7 = vpop.f32.mrf.mxu1 }
 0x56b   : > { %v2280_v8 = vadd.f32 %v2279_v6, %v2206_v3 }
 0x56c   : > { %v4763_v9 = vpop.f32.mrf.mxu0  ;;  %v4788_v10 = vpop.f32.mrf.mxu1 }
 0x56d   : > { %v2354_v11 = vadd.f32 %v2353_v62, %v2280_v8 }
 0x56e   : > { %v2427_v12 = vpop.f32.mrf.mxu0  ;;  %v2815_v14 = vpop.f32.mrf.mxu1 }
 0x56f   : > { %v2428_v15 = vadd.f32 %v2427_v12, %v2354_v11 }
 0x570   : > { %v4773_v16 = vpop.f32.mrf.mxu0  ;;  %v4798_v17 = vpop.f32.mrf.mxu1 }
 0x571   : > { %v5520_v18 = vadd.f32 %v2499_v2, %v2428_v15 }
 0x572   : > { %v2591_v19 = vpop.f32.mrf.mxu0  ;;  %v2961_v20 = vpop.f32.mrf.mxu1 }
 0x573   : > { %v2668_v23 = vadd.f32 %v2667_v7, %v2591_v19 }
 0x574   : > { %v4783_v21 = vpop.f32.mrf.mxu0  ;;  %v4808_v22 = vpop.f32.mrf.mxu1 }
 0x576   : > { %v2741_v24 = vpop.f32.mrf.mxu0 }
 0x577   : > { %v2742_v25 = vadd.f32 %v2741_v24, %v2668_v23 }
 0x578   : > { %v4793_v26 = vpop.f32.mrf.mxu0 }
 0x579   : > { %v2816_v27 = vadd.f32 %v2815_v14, %v2742_v25 }
 0x57a   : > { %v2889_v28 = vpop.f32.mrf.mxu0 }
 0x57b   : > { %v2890_v29 = vadd.f32 %v2889_v28, %v2816_v27 }
 0x57c   : > { %v4803_v30 = vpop.f32.mrf.mxu0 }
 0x57d   : > { %v2962_v32 = vadd.f32 %v2961_v20, %v2890_v29 }
 0x57f   : > { %v2965_v33 = vsel %vm672_vm2, %v2962_v32, -inf }
 0x580   : > { %2966 = vmax.xlane.f32.xlu0 %v2965_v33 }
 0x596   : > { %3897 = vrot.lane.b32.xlu0 %v5344_v47, %s5130_s27  ;;  %v3551_v47 = vand.u32 4294901760, %v5525_v49 }
 0x598   : > { %v3552_v58 = vsub.f32 %v5525_v49, %v3551_v47 }
 0x59a   : > { %v3553_v61 = vand.u32 4294901760, %v3552_v58 }
 0x609   : > { %v2967_v34 = vpop.xlane.xlu0 %2966 }
 0x60a   : > { %v2968_v35 = vsub.f32 %v2962_v32, %v2967_v34 }
 0x60c   : > { %v2969_v37 = vmul.f32 1.442695, %v2968_v35 }
 0x60d   : > { %v3898_v53 = vpop.permute.xlu0 %3897 }
 0x60e   : > { %4978 = vpow2.f32 %v2969_v37  ;;  %v5536_v59 = vand.u32 4294901760, %v3898_v53 }
 0x610   : > { %v5543_v62 = vsub.f32 %v3898_v53, %v5536_v59 }
 0x61b   : > { %v4979_v41 = vpop.eup %4978 }
 0x61c   : > { %v2971_v44 = vsel %vm672_vm2, %v4979_v41, 0.0  ;;  %v2978_v45 = vsel %vm672_vm2, %v4979_v41, 0  ;;  %v2048_v41 = vsel %vm672_vm2, %v5461_v36, 0.0  ;;  %v1130_v36 = vsel %vm672_vm2, %v5392_v31, 0.0 }
 0x61d   : > { %2972 = vadd.xlane.f32.xlu0 %v2971_v44  ;;  %v3046_v46 = vand.u32 4294901760, %v2978_v45 }
 0x61f   : > { %v3047_v54 = vsub.f32 %v2978_v45, %v3046_v46  ;;  %4817 = vmatmul.mubr.f32.vlgmr.msra.gmra.mxu1 %v3046_v46 }
 0x620   : > { %4825 = vmatpush3.msra.mxu1 %v5472_v50  ;;  %4826 = vmatprep.mubr.msk.f32.mxu1 %vm5119_vm0, %v5118_v0 }
 0x621   : > { %4834 = vmatprep.subr.mxu1 %v5118_v0  ;;  %v3048_v57 = vand.u32 4294901760, %v3047_v54 }
 0x623   : > { %4827 = vmatmul.mubr.f32.vlgmr.msra.gmra.mxu1 %v3048_v57  ;;  %v3049_v48 = vsub.f32 %v3047_v54, %v3048_v57 }
 0x624   : > { %4835 = vmatpush3.msra.mxu1 %v5472_v50  ;;  %4836 = vmatprep.mubr.msk.f32.mxu1 %vm5119_vm0, %v5118_v0  ;;  %v4012_v50 = vand.u32 4294901760, %v5543_v62 }
 0x625   : > { %4844 = vmatprep.subr.mxu1 %v5118_v0  ;;  %v3050_v60 = vand.u32 4294901760, %v3049_v48 }
 0x626   : > { %v4013_v2 = vsub.f32 %v5543_v62, %v4012_v50 }
 0x627   : > { %4812 = vmatmul.mubr.f32.vlgmr.msra.gmra.mxu0 %v3050_v60  ;;  %4837 = vmatmul.mubr.f32.vlgmr.msra.gmra.mxu1 %v3046_v46 }
 0x628   : > { %4820 = vmatpush3.msra.mxu0 %v5479_v56  ;;  %4845 = vmatpush3.xpose.msra.mxu1 %v3553_v61  ;;  %v3512_v56 = vand.u32 4294901760, %v3511_v1 }
 0x629   : > { %4821 = vmatprep.mubr.msk.f32.mxu0 %vm5119_vm0, %v5118_v0  ;;  %4829 = vmatprep.subr.mxu0 %v5118_v0 }
 0x62a   : > { %4846 = vmatprep.mubr.msk.f32.mxu1 %vm5119_vm0, %v5118_v0  ;;  %4854 = vmatprep.subr.mxu1 %v5118_v0 }
 0x62b   : > { %4822 = vmatmul.mubr.f32.vlgmr.msra.gmra.mxu0 %v3047_v54  ;;  %4847 = vmatmul.mubr.f32.vlgmr.msra.gmra.mxu1 %v3508_v55 }
 0x62c   : > { %4830 = vmatpush3.msra.mxu0 %v3089_v42  ;;  %4855 = vmatpush3.xpose.msra.mxu1 %v3473_v40  ;;  %v4014_v42 = vand.u32 4294901760, %v4013_v2 }
 0x62d   : > { %4831 = vmatprep.mubr.msk.f32.mxu0 %vm5119_vm0, %v5118_v0  ;;  %4839 = vmatprep.subr.mxu0 %v5118_v0 }
 0x62e   : > { %4856 = vmatprep.mubr.msk.f32.mxu1 %vm5119_vm0, %v5118_v0  ;;  %4864 = vmatprep.subr.mxu1 %v5118_v0 }
 0x62f   : > { %4832 = vmatmul.mubr.f32.vlgmr.msra.gmra.mxu0 %v3046_v46  ;;  %4857 = vmatmul.mubr.f32.vlgmr.msra.gmra.mxu1 %v3510_v63 }
 0x630   : > { %4840 = vmatpush3.xpose.msra.mxu0 %v3473_v40  ;;  %4865 = vmatpush3.xpose.msra.mxu1 %v3473_v40 }
 0x631   : > { %4841 = vmatprep.mubr.msk.f32.mxu0 %vm5119_vm0, %v5118_v0  ;;  %4849 = vmatprep.subr.mxu0 %v5118_v0 }
 0x632   : > { %4866 = vmatprep.mubr.msk.f32.mxu1 %vm5119_vm0, %v5118_v0  ;;  %4874 = vmatprep.subr.mxu1 %v5118_v0 }
 0x633   : > { %4842 = vmatmul.mubr.f32.vlgmr.msra.gmra.mxu0 %v3512_v56  ;;  %4867 = vmatmul.mubr.f32.vlgmr.msra.gmra.mxu1 %v3508_v55 }
 0x634   : > { %4850 = vmatpush3.xpose.msra.mxu0 %v5525_v49  ;;  %4875 = vmatpush3.msra.mxu1 %v4014_v42 }
 0x635   : > { %4851 = vmatprep.mubr.msk.f32.mxu0 %vm5119_vm0, %v5118_v0  ;;  %4859 = vmatprep.subr.mxu0 %v5118_v0 }
 0x636   : > { %4876 = vmatprep.mubr.msk.f32.mxu1 %vm5119_vm0, %v5118_v0  ;;  %4884 = vmatprep.subr.mxu1 %v5118_v0 }
 0x637   : > { %4852 = vmatmul.mubr.f32.vlgmr.msra.gmra.mxu0 %v3509_v51 }
 0x638   : > { %4860 = vmatpush3.xpose.msra.mxu0 %v3551_v47  ;;  %4861 = vmatprep.mubr.msk.f32.mxu0 %vm5119_vm0, %v5118_v0 }
 0x639   : > { %4869 = vmatprep.subr.mxu0 %v5118_v0 }
 0x63b   : > { %4862 = vmatmul.mubr.f32.vlgmr.msra.gmra.mxu0 %v3508_v55 }
 0x63c   : > { %4870 = vmatpush3.msra.mxu0 %v5536_v59  ;;  %4871 = vmatprep.mubr.msk.f32.mxu0 %vm5119_vm0, %v5118_v0 }
 0x63d   : > { %4879 = vmatprep.subr.mxu0 %v5118_v0 }
 0x6a6   : > { %v2973_v58 = vpop.xlane.xlu0 %2972 }
 0x6df   : > { %v3128_v3 = vpop.f32.mrf.mxu1 }
 0x6e1   : > { %v4818_v4 = vpop.f32.mrf.mxu1 }
 0x6e3   : > { %v3276_v5 = vpop.f32.mrf.mxu1 }
 0x6e5   : > { %v4828_v6 = vpop.f32.mrf.mxu1 }
 0x6e7   : > { %v3052_v7 = vpop.f32.mrf.mxu0  ;;  %v3422_v8 = vpop.f32.mrf.mxu1 }
 0x6e8   : > { %v3129_v9 = vadd.f32 %v3128_v3, %v3052_v7 }
 0x6e9   : > { %v4813_v10 = vpop.f32.mrf.mxu0  ;;  %v4838_v11 = vpop.f32.mrf.mxu1 }
 0x6eb   : > { %v3202_v12 = vpop.f32.mrf.mxu0  ;;  %v3590_v14 = vpop.f32.mrf.mxu1 }
 0x6ec   : > { %v3203_v15 = vadd.f32 %v3202_v12, %v3129_v9 }
 0x6ed   : > { %v4823_v16 = vpop.f32.mrf.mxu0  ;;  %v4848_v17 = vpop.f32.mrf.mxu1 }
 0x6ee   : > { %v3277_v19 = vadd.f32 %v3276_v5, %v3203_v15 }
 0x6ef   : > { %v3350_v20 = vpop.f32.mrf.mxu0  ;;  %v3738_v21 = vpop.f32.mrf.mxu1 }
 0x6f0   : > { %v3351_v22 = vadd.f32 %v3350_v20, %v3277_v19 }
 0x6f1   : > { %v4833_v23 = vpop.f32.mrf.mxu0  ;;  %v4858_v24 = vpop.f32.mrf.mxu1 }
 0x6f2   : > { %v3423_v25 = vadd.f32 %v3422_v8, %v3351_v22 }
 0x6f3   : > { %v3514_v26 = vpop.f32.mrf.mxu0  ;;  %v3884_v27 = vpop.f32.mrf.mxu1 }
 0x6f4   : > { %v3591_v30 = vadd.f32 %v3590_v14, %v3514_v26 }
 0x6f5   : > { %v4843_v28 = vpop.f32.mrf.mxu0  ;;  %v4868_v29 = vpop.f32.mrf.mxu1 }
 0x6f7   : > { %v3664_v32 = vpop.f32.mrf.mxu0 }
 0x6f8   : > { %v3665_v33 = vadd.f32 %v3664_v32, %v3591_v30 }
 0x6f9   : > { %v4853_v34 = vpop.f32.mrf.mxu0 }
 0x6fa   : > { %v3739_v35 = vadd.f32 %v3738_v21, %v3665_v33 }
 0x6fb   : > { %v3812_v37 = vpop.f32.mrf.mxu0 }
 0x6fc   : > { %v3813_v38 = vadd.f32 %v3812_v37, %v3739_v35 }
 0x6fd   : > { %v4863_v39 = vpop.f32.mrf.mxu0 }
 0x6fe   : > { %v3885_v40 = vadd.f32 %v3884_v27, %v3813_v38 }
 0x700   : > { %v3888_v49 = vsel %vm672_vm2, %v3885_v40, -inf }
 0x701   : > { %3889 = vmax.xlane.f32.xlu1 %v3888_v49 }
 0x705   : > { %2049 = vadd.xlane.f32.xlu1 %v2048_v41 }
 0x78a   : > { %v3890_v43 = vpop.xlane.xlu1 %3889 }
 0x78b   : > { %v3891_v44 = vsub.f32 %v3885_v40, %v3890_v43 }
 0x78d   : > { %v3892_v45 = vmul.f32 1.442695, %v3891_v44 }
 0x78e   : > { %v2050_v53 = vpop.xlane.xlu1 %2049 }
 0x78f   : > { %4980 = vpow2.f32 %v3892_v45 }
 0x790   : > { %4982 = vrcp.f32 %v2050_v53 }
 0x791   : > { %4984 = vrcp.f32 %v2973_v58 }
 0x79c   : > { %v4981_v46 = vpop.eup %4980 }
 0x79d   : > { %v3894_v47 = vsel %vm672_vm2, %v4981_v46, 0.0  ;;  %v3901_v52 = vsel %vm672_vm2, %v4981_v46, 0  ;;  %v4983_v31 = vpop.eup %4982 }
 0x79e   : > { %3895 = vadd.xlane.f32.xlu1 %v3894_v47  ;;  %v3969_v54 = vand.u32 4294901760, %v3901_v52  ;;  %v4985_v60 = vpop.eup %4984 }
 0x79f   : > { %v3427_v61 = vmul.f32 %v4985_v60, %v3423_v25 }
 0x7a0   : > { %v3970_v55 = vsub.f32 %v3901_v52, %v3969_v54  ;;  %4877 = vmatmul.mubr.f32.vlgmr.msra.gmra.mxu1 %v3969_v54 }
 0x7a1   : > { %4885 = vmatpush3.msra.mxu1 %v5536_v59  ;;  %4886 = vmatprep.mubr.msk.f32.mxu1 %vm5119_vm0, %v5118_v0 }
 0x7a2   : > { %1131 = vadd.xlane.f32.xlu1 %v1130_v36  ;;  %4894 = vmatprep.subr.mxu1 %v5118_v0  ;;  %v3971_v57 = vand.u32 4294901760, %v3970_v55 }
 0x7a4   : > { %4887 = vmatmul.mubr.f32.vlgmr.msra.gmra.mxu1 %v3971_v57  ;;  %v3972_v48 = vsub.f32 %v3970_v55, %v3971_v57 }
 0x7a5   : > { %4895 = vmatpush3.msra.mxu1 %v5536_v59  ;;  %4896 = vmatprep.mubr.msk.f32.mxu1 %vm5119_vm0, %v5118_v0  ;;  %v2504_v59 = vmul.f32 %v4983_v31, %v5520_v18 }
 0x7a6   : > { %v3973_v51 = vand.u32 4294901760, %v3972_v48 }
 0x7a8   : > { %4872 = vmatmul.mubr.f32.vlgmr.msra.gmra.mxu0 %v3973_v51  ;;  %4897 = vmatmul.mubr.f32.vlgmr.msra.gmra.mxu1 %v3969_v54 }
 0x7a9   : > { %4880 = vmatpush3.msra.mxu0 %v5543_v62  ;;  %4881 = vmatprep.mubr.msk.f32.mxu0 %vm5119_vm0, %v5118_v0 }
 0x7aa   : > { %4889 = vmatprep.subr.mxu0 %v5118_v0 }
 0x7ac   : > { %4882 = vmatmul.mubr.f32.vlgmr.msra.gmra.mxu0 %v3970_v55 }
 0x7ad   : > { %4890 = vmatpush3.msra.mxu0 %v4012_v50  ;;  %4891 = vmatprep.mubr.msk.f32.mxu0 %vm5119_vm0, %v5118_v0 }
 0x7b0   : > { %4892 = vmatmul.mubr.f32.vlgmr.msra.gmra.mxu0 %v3969_v54 }
 0x7b3   : > { %2506 = vrot.lane.b32.xlu1 %v2504_v59, %s5131_s28 }
 0x7b7   : > { %3429 = vrot.lane.b32.xlu1 %v3427_v61, %s5132_s3 }
 0x827   : > { %v3896_v63 = vpop.xlane.xlu1 %3895 }
 0x82b   : > { %v1132_v1 = vpop.xlane.xlu1 %1131 }
 0x82c   : > { %4986 = vrcp.f32 %v1132_v1 }
 0x82d   : > { %4988 = vrcp.f32 %v3896_v63 }
 0x82f   : > { %v2507_v2 = vpop.permute.xlu1 %2506 }
 0x833   : > { %v3430_v0 = vpop.permute.xlu1 %3429 }
 0x839   : > { %v4987_v56 = vpop.eup %4986 }
 0x83a   : > { %v1586_v62 = vmul.f32 %v4987_v56, %v5451_v13  ;;  %v4989_v17 = vpop.eup %4988 }
 0x83c   : > { %1587 = vst.msk [vmem:[#allocation2] sm:$0xff] %vm672_vm2, %v1586_v62 }
 0x83d   : > { %2510 = vst.msk [vmem:[#allocation2] sm:$0xff] %vm2509_vm3, %v2507_v2 }
 0x83e   : > { %3433 = vst.msk [vmem:[#allocation2] sm:$0xff] %vm3432_vm4, %v3430_v0 }
 0x860   : > { %v4051_v18 = vpop.f32.mrf.mxu1 }
 0x862   : > { %v4878_v50 = vpop.f32.mrf.mxu1 }
 0x864   : > { %v4199_v42 = vpop.f32.mrf.mxu1 }
 0x866   : > { %v4888_v3 = vpop.f32.mrf.mxu1 }
 0x868   : > { %v3975_v4 = vpop.f32.mrf.mxu0  ;;  %v4345_v5 = vpop.f32.mrf.mxu1 }
 0x869   : > { %v4052_v8 = vadd.f32 %v4051_v18, %v3975_v4 }
 0x86a   : > { %v4873_v6 = vpop.f32.mrf.mxu0  ;;  %v4898_v7 = vpop.f32.mrf.mxu1 }
 0x86c   : > { %v4125_v9 = vpop.f32.mrf.mxu0 }
 0x86d   : > { %v4126_v13 = vadd.f32 %v4125_v9, %v4052_v8 }
 0x86e   : > { %v4883_v10 = vpop.f32.mrf.mxu0 }
 0x86f   : > { %v4200_v11 = vadd.f32 %v4199_v42, %v4126_v13 }
 0x870   : > { %v4273_v12 = vpop.f32.mrf.mxu0 }
 0x871   : > { %v4274_v14 = vadd.f32 %v4273_v12, %v4200_v11 }
 0x872   : > { %v4893_v15 = vpop.f32.mrf.mxu0 }
 0x873   : > { %v4346_v16 = vadd.f32 %v4345_v5, %v4274_v14 }
 0x875   : > { %v4350_v19 = vmul.f32 %v4989_v17, %v4346_v16 }
 0x877   : > { %4352 = vrot.lane.b32.xlu0 %v4350_v19, %s5133_s4 }
 0x8e9   : > { %v4353_v20 = vpop.permute.xlu0 %4352 }
 0x8ea   : > { %4356 = vst.msk [vmem:[#allocation2] sm:$0xff] %vm4355_vm5, %v4353_v20 }
 0x8f1   : > { %v4357_v21 = vld [vmem:[#allocation2] sm:$0xff] }
 0x8f2   : > { %4358 = vst.msk [vmem:[%s173_s14] sm:$0xff] %vm179_vm1, %v4357_v21 }
 0x8f3   : > { %5057 = shalt.err (!%p5054_p0)
}
 0x8f4   : > { %s5058_s23 = scalar_lea.hbm %s5615_s8, 128  ;;  %s5062_s25 = scalar_lea.hbm %s5655_s2, 256 }
 0x8f5   : > { %p5059_p5 = scmp.ne.s32.totalorder %s5615_s8, %s5058_s23  ;;  %p5063_p1 = scmp.lt.s32.totalorder %s5615_s8, %s5655_s2 }
 0x8f6   : > { %p5064_p4 = scmp.lt.s32.totalorder %s5062_s25, %s5058_s23 }
 0x8f7   : > { %p5060_p9 = pnand %p5059_p5, %p5671_p3 }
 0x8f8   : > { %p5065_p6 = por %p5064_p4, %p5063_p1 }
 0x8f9   : > { %p5061_p12 = pneg %p5060_p9 }
 0x8fb   : > { %p5066_p8 = pnand %p5065_p6, %p5061_p12 }
 0x8fd   : > { %5069 = shalt.err (!%p5066_p8)
}
 0x8fe   : > { %4905 = dma.vmem_to_hbm [thread:$0]  (%p5671_p3), %s4374_s22, 128, %s5615_s8, %s4360_s18  }
 0x8ff PF: > { %s4385_s28 = sand.u32 1, %s5100_s9   ;;  %p5672_p11 = scmp.ne.s32.totalorder %s5661_s16, 0 }
 0x900   : > { %p5673_p7 = scmp.ge.s32.totalorder %s5112_s12, 2  ;;  %s4386_s3 = scalar_lea.sflag [#allocation5], %s4385_s28 }
 0x902   : > { %p4916_p10 = pnand %p5673_p7, %p5672_p11 }
 0x904   : > { %p4917_p2 = pneg %p4916_p10 }
 0x906   : > { %5095 = dma.done.wait (%p4917_p2), %s4386_s3, 128  }
 0x907   : > { %5097 = vsyncadd (%p4917_p2), %s4386_s3, 4294967168  ;;  %p16_p13 = scmp.ge.s32.totalorder %s5204_s21, 4   ;;  %s5674_s9 = smov %s5104_s10 }
 0x908   : > { %s5675_s10 = smov %s5108_s11  ;;  %s5676_s11 = smov %s5221_s29 }
 0x909   : > { %s5677_s12 = smov %s5204_s21  ;;  %18 = sbr.rel (!%p16_p13) target bundleno = 6 (0x6), region = 77 }
 0x90e   :  { %4391 = vsyncpa [#allocation4], 1 }
 0x90f   :  { %4393 = vsyncpa [#allocation4 + $0x1], 1 }
 0x910   :  { %4394 = vsyncpa [#allocation7], 1 }
 0x911   :  { %4395 = vsyncpa [#allocation5], 1 }
 0x912   :  { %4397 = vsyncpa [#allocation5 + $0x1], 1 }

</bundles_post_ra>
